<compile_context>
chip_gen: v6e
topology: v6e:2x2x1
jax: 0.10.0
libtpu: 0.0.40
codegen_flags: <defaults>
</compile_context>

<pallas_src>
import functools

import jax
import jax.numpy as jnp
from jax.experimental import pallas as pl
from jax.experimental.pallas import tpu as pltpu


def conv_block_kernel(x_ref, w_ref, o_ref, *, eps, hw, batch):
    """Single-invocation kernel, lane-dense layout.

    x_ref: (K, B*HW)      im2col'ed input (K = KH*KW*Cin); lane = b*HW + pixel
    w_ref: (Cout, K)      flattened conv weights (tap-major, then Cin)
    o_ref: (B, Cout, HW)  output (== NCHW once the spatial dim is un-flattened)
    """
    x = x_ref[...]                                            # (K, B*HW)
    w = w_ref[...]                                            # (Cout, K)

    # Conv2d (stride 1, 'same' padding applied in wrapper) as ONE MXU matmul
    # with all batch elements concatenated along the lane axis (N = B*HW).
    acc = jnp.dot(w, x, preferred_element_type=jnp.float32)   # (Cout, B*HW)

    inv_hw = jnp.float32(1.0 / hw)
    for b in range(batch):                        # static loop (B known at trace)
        blk = acc[:, b * hw:(b + 1) * hw]         # static 128-aligned lane slice
        # InstanceNorm2d (affine=False, biased variance, eps) in one fused sweep.
        s1 = jnp.sum(blk, axis=1, keepdims=True)              # (Cout, 1)
        s2 = jnp.sum(blk * blk, axis=1, keepdims=True)        # (Cout, 1)
        mean = s1 * inv_hw
        var = jnp.maximum(s2 * inv_hw - mean * mean, 0.0)
        y = (blk - mean) * jax.lax.rsqrt(var + eps)
        # ReLU + unmasked lane-dense store of a full (Cout, HW) slab.
        o_ref[b] = jnp.maximum(y, 0.0).astype(o_ref.dtype)


@functools.partial(jax.jit, static_argnames=("eps",))
def conv_block(x_nchw, w_oihw, bias, *, eps=1e-5):
    """Forward pass of Conv_block.  Returns NCHW float32.

    `bias` is accepted for API parity with nn.Conv2d but is not applied in the
    kernel: InstanceNorm2d(affine=False) subtracts the per-channel spatial
    mean immediately after the conv, so a per-channel constant cancels exactly.
    """
    del bias  # mathematically redundant before InstanceNorm2d(affine=False)

    B, Cin, H, W = x_nchw.shape
    Cout, Cin_w, KH, KW = w_oihw.shape
    assert Cin == Cin_w
    # Symmetric (size-1)//2 padding matches the PyTorch module (odd kernels).
    ph, pw = (KH - 1) // 2, (KW - 1) // 2
    H_out = H + 2 * ph - KH + 1
    W_out = W + 2 * pw - KW + 1
    HW = H_out * W_out                 # 256 here; multiple of 128 keeps the
    K = KH * KW * Cin                  # per-sample lane slices tile-aligned.

    # ---- plain-JAX glue (jitted; producer fused into the pallas_call) ------
    x = x_nchw.astype(jnp.float32)
    x_pad = jnp.pad(x, ((0, 0), (0, 0), (ph, ph), (pw, pw)))
    x_pad_t = jnp.transpose(x_pad, (1, 0, 2, 3))              # (Cin, B, Hp, Wp)
    cols = []
    for kh in range(KH):
        for kw in range(KW):
            cols.append(
                x_pad_t[:, :, kh:kh + H_out, kw:kw + W_out].reshape(Cin, B * HW))
    x_col = jnp.concatenate(cols, axis=0)                     # (K, B*HW)
    # Weight index order must match im2col order: (kh*KW + kw)*Cin + cin.
    w_flat = jnp.transpose(w_oihw, (0, 2, 3, 1)).reshape(Cout, K)
    w_flat = w_flat.astype(jnp.float32)

    kernel = functools.partial(conv_block_kernel, eps=eps, hw=HW, batch=B)

    cost = pl.CostEstimate(
        flops=2 * Cout * K * B * HW + 8 * B * Cout * HW,
        transcendentals=B * Cout,
        bytes_accessed=4 * (K * B * HW + Cout * K + B * Cout * HW),
    )

    out = pl.pallas_call(
        kernel,
        out_shape=jax.ShapeDtypeStruct((B, Cout, HW), jnp.float32),
        in_specs=[
            pl.BlockSpec((K, B * HW), lambda: (0, 0)),
            pl.BlockSpec((Cout, K), lambda: (0, 0)),
        ],
        out_specs=pl.BlockSpec((B, Cout, HW), lambda: (0, 0, 0)),
        compiler_params=pltpu.CompilerParams(
            vmem_limit_bytes=32 * 1024 * 1024,
            # Let XLA fuse the im2col producer into the x_col operand.
            allow_input_fusion=[True, False],
        ),
        cost_estimate=cost,
    )(x_col, w_flat)

    # Already channel-major: just un-flatten the spatial dim (no transpose).
    return out.reshape(B, Cout, H_out, W_out)


def conv_block_reference(x_nchw, w_oihw, bias, *, eps=1e-5):
    """Pure-JAX reference matching PyTorch Conv_block semantics (incl. bias)."""
    Cout, _, KH, KW = w_oihw.shape
    ph, pw = (KH - 1) // 2, (KW - 1) // 2
    y = jax.lax.conv_general_dilated(
        x_nchw.astype(jnp.float32), w_oihw.astype(jnp.float32),
        window_strides=(1, 1), padding=((ph, ph), (pw, pw)),
        dimension_numbers=("NCHW", "OIHW", "NCHW"))
    y = y + bias.reshape(1, Cout, 1, 1)
    mean = jnp.mean(y, axis=(2, 3), keepdims=True)
    var = jnp.mean((y - mean) ** 2, axis=(2, 3), keepdims=True)
    y = (y - mean) * jax.lax.rsqrt(var + eps)
    return jnp.maximum(y, 0.0)


if __name__ == "__main__":
    # Small shapes consistent with Conv_block(in_ch=4, out_ch=8, size=(3,3)).
    B, Cin, H, W = 2, 4, 16, 16
    Cout, KH, KW = 8, 3, 3

    key = jax.random.PRNGKey(0)
    kx, kw_, kb = jax.random.split(key, 3)
    x = jax.random.normal(kx, (B, Cin, H, W), dtype=jnp.float32)
    # Deterministic parameter init (synthetic, not a checkpoint).
    fan_in = Cin * KH * KW
    w = jax.random.uniform(kw_, (Cout, Cin, KH, KW), dtype=jnp.float32,
                           minval=-1.0, maxval=1.0) / jnp.sqrt(fan_in)
    b = jax.random.uniform(kb, (Cout,), dtype=jnp.float32,
                           minval=-1.0, maxval=1.0) / jnp.sqrt(fan_in)

    out = jax.block_until_ready(conv_block(x, w, b))

    ref = conv_block_reference(x, w, b)
    assert out.shape == (B, Cout, H, W)
    assert jnp.allclose(out, ref, atol=1e-4, rtol=1e-4), "mismatch vs reference"

    print("KERNEL_OK")
</pallas_src>

<mosaic_0001>
module attributes {stable_mosaic.version = 11 : i64} {
  func.func @conv_block_kernel(%arg0: memref<36x512xf32, #tpu.memory_space<vmem>>, %arg1: memref<8x36xf32, #tpu.memory_space<vmem>>, %arg2: memref<2x8x256xf32, #tpu.memory_space<vmem>>) attributes {dimension_semantics = [], scalar_prefetch = 0 : i64, scratch_operands = 0 : i64, tpu.core_type = #tpu.core_type<tc>} {
    %c0 = arith.constant 0 : index
    %c0_0 = arith.constant 0 : index
    %0 = vector.load %arg0[%c0, %c0_0] : memref<36x512xf32, #tpu.memory_space<vmem>>, vector<36x512xf32>
    %c0_1 = arith.constant 0 : index
    %c0_2 = arith.constant 0 : index
    %1 = vector.load %arg1[%c0_1, %c0_2] : memref<8x36xf32, #tpu.memory_space<vmem>>, vector<8x36xf32>
    %cst = arith.constant dense<0.000000e+00> : vector<8x512xf32>
    %2 = tpu.matmul %1, %0, %cst {dimension_numbers = #tpu.dot_dimension_numbers<[1], [0], [0], [1], [0, 0, 1, 1], [], []>} : vector<8x36xf32>, vector<36x512xf32>, vector<8x512xf32> -> vector<8x512xf32>
    %3 = vector.extract_strided_slice %2 {offsets = [0, 0], sizes = [8, 256], strides = [1, 1]} : vector<8x512xf32> to vector<8x256xf32>
    %cst_3 = arith.constant dense<0.000000e+00> : vector<8xf32>
    %4 = vector.multi_reduction <add>, %3, %cst_3 [1] : vector<8x256xf32> to vector<8xf32>
    %5 = vector.shape_cast %4 : vector<8xf32> to vector<8x1xf32>
    %6 = arith.mulf %3, %3 : vector<8x256xf32>
    %cst_4 = arith.constant dense<0.000000e+00> : vector<8xf32>
    %7 = vector.multi_reduction <add>, %6, %cst_4 [1] : vector<8x256xf32> to vector<8xf32>
    %8 = vector.shape_cast %7 : vector<8xf32> to vector<8x1xf32>
    %cst_5 = arith.constant 3.906250e-03 : f32
    %9 = vector.broadcast %cst_5 : f32 to vector<8x1xf32>
    %10 = arith.mulf %5, %9 : vector<8x1xf32>
    %cst_6 = arith.constant 3.906250e-03 : f32
    %11 = vector.broadcast %cst_6 : f32 to vector<8x1xf32>
    %12 = arith.mulf %8, %11 : vector<8x1xf32>
    %13 = arith.mulf %10, %10 : vector<8x1xf32>
    %14 = arith.subf %12, %13 : vector<8x1xf32>
    %cst_7 = arith.constant 0.000000e+00 : f32
    %15 = vector.broadcast %cst_7 : f32 to vector<8x1xf32>
    %16 = arith.maximumf %14, %15 : vector<8x1xf32>
    %17 = vector.broadcast %10 : vector<8x1xf32> to vector<8x256xf32>
    %18 = arith.subf %3, %17 : vector<8x256xf32>
    %cst_8 = arith.constant 9.99999974E-6 : f32
    %19 = vector.broadcast %cst_8 : f32 to vector<8x1xf32>
    %20 = arith.addf %16, %19 : vector<8x1xf32>
    %21 = math.rsqrt %20 : vector<8x1xf32>
    %22 = vector.broadcast %21 : vector<8x1xf32> to vector<8x256xf32>
    %23 = arith.mulf %18, %22 : vector<8x256xf32>
    %cst_9 = arith.constant 0.000000e+00 : f32
    %24 = vector.broadcast %cst_9 : f32 to vector<8x256xf32>
    %25 = arith.maximumf %23, %24 : vector<8x256xf32>
    %c0_10 = arith.constant 0 : index
    %c0_11 = arith.constant 0 : index
    %c0_12 = arith.constant 0 : index
    %26 = vector.load %arg2[%c0_10, %c0_11, %c0_12] : memref<2x8x256xf32, #tpu.memory_space<vmem>>, vector<1x8x256xf32>
    %27 = vector.shape_cast %26 : vector<1x8x256xf32> to vector<8x256xf32>
    %28 = vector.shape_cast %25 : vector<8x256xf32> to vector<1x8x256xf32>
    tpu.vector_store %arg2[%c0_10, %c0_11, %c0_12], %28 {strides = array<i32>} : memref<2x8x256xf32, #tpu.memory_space<vmem>>, vector<1x8x256xf32>,
    %29 = vector.extract_strided_slice %2 {offsets = [0, 256], sizes = [8, 256], strides = [1, 1]} : vector<8x512xf32> to vector<8x256xf32>
    %cst_13 = arith.constant dense<0.000000e+00> : vector<8xf32>
    %30 = vector.multi_reduction <add>, %29, %cst_13 [1] : vector<8x256xf32> to vector<8xf32>
    %31 = vector.shape_cast %30 : vector<8xf32> to vector<8x1xf32>
    %32 = arith.mulf %29, %29 : vector<8x256xf32>
    %cst_14 = arith.constant dense<0.000000e+00> : vector<8xf32>
    %33 = vector.multi_reduction <add>, %32, %cst_14 [1] : vector<8x256xf32> to vector<8xf32>
    %34 = vector.shape_cast %33 : vector<8xf32> to vector<8x1xf32>
    %cst_15 = arith.constant 3.906250e-03 : f32
    %35 = vector.broadcast %cst_15 : f32 to vector<8x1xf32>
    %36 = arith.mulf %31, %35 : vector<8x1xf32>
    %cst_16 = arith.constant 3.906250e-03 : f32
    %37 = vector.broadcast %cst_16 : f32 to vector<8x1xf32>
    %38 = arith.mulf %34, %37 : vector<8x1xf32>
    %39 = arith.mulf %36, %36 : vector<8x1xf32>
    %40 = arith.subf %38, %39 : vector<8x1xf32>
    %cst_17 = arith.constant 0.000000e+00 : f32
    %41 = vector.broadcast %cst_17 : f32 to vector<8x1xf32>
    %42 = arith.maximumf %40, %41 : vector<8x1xf32>
    %43 = vector.broadcast %36 : vector<8x1xf32> to vector<8x256xf32>
    %44 = arith.subf %29, %43 : vector<8x256xf32>
    %cst_18 = arith.constant 9.99999974E-6 : f32
    %45 = vector.broadcast %cst_18 : f32 to vector<8x1xf32>
    %46 = arith.addf %42, %45 : vector<8x1xf32>
    %47 = math.rsqrt %46 : vector<8x1xf32>
    %48 = vector.broadcast %47 : vector<8x1xf32> to vector<8x256xf32>
    %49 = arith.mulf %44, %48 : vector<8x256xf32>
    %cst_19 = arith.constant 0.000000e+00 : f32
    %50 = vector.broadcast %cst_19 : f32 to vector<8x256xf32>
    %51 = arith.maximumf %49, %50 : vector<8x256xf32>
    %c1 = arith.constant 1 : index
    %c0_20 = arith.constant 0 : index
    %c0_21 = arith.constant 0 : index
    %52 = vector.load %arg2[%c1, %c0_20, %c0_21] : memref<2x8x256xf32, #tpu.memory_space<vmem>>, vector<1x8x256xf32>
    %53 = vector.shape_cast %52 : vector<1x8x256xf32> to vector<8x256xf32>
    %54 = vector.shape_cast %51 : vector<8x256xf32> to vector<1x8x256xf32>
    tpu.vector_store %arg2[%c1, %c0_20, %c0_21], %54 {strides = array<i32>} : memref<2x8x256xf32, #tpu.memory_space<vmem>>, vector<1x8x256xf32>,
    return
  }
}

</mosaic_0001>

<bundles_post_ra>
// kernel: conv_block.1
= control target key start
LH: loop header
LB: loop body
LE: loop exit
PB: predicated region body
PF: predicated region fallthrough
CT: control target
= control target key end

     0   :  { %vm36_vm0 = vcmask 1043456   ;;  %v255_v3 = vmov 0.0   ;;  %vm32_vm1 = vcmask 293888   ;;  %s350_s0 = inlined_call_operand.vmem [shape: f32[36,512], index: 0, kind: input, shape index: {}]   ;;  %s351_s1 = inlined_call_operand.vmem [shape: f32[8,36], index: 1, kind: input, shape index: {}]   ;;  %s352_s2 = inlined_call_operand.vmem [shape: f32[2,8,256], index: 2, kind: output, shape index: {}]  }
   0x1   :  { %v28_v0 = vld [vmem:[%s350_s0 + $0x88] sm:$0xf]  ;;  %v27_v1 = vld [vmem:[%s350_s0 + $0x80] sm:$0xf]  ;;  %113 = vmatprep.mubr.f32.mxu0 %v255_v3  ;;  %184 = vmatprep.mubr.f32.mxu1 %v255_v3  ;;  %v30_v4 = vld [vmem:[%s350_s0 + $0x98] sm:$0xf] }
   0x2   :  { %v24_v2 = vld [vmem:[%s350_s0 + $0x68] sm:$0xff]  ;;  %242 = vmatprep.subr.msk.mxu0 %vm36_vm0, %v28_v0  ;;  %v23_v5 = vld [vmem:[%s350_s0 + $0x60] sm:$0xff]  ;;  %v29_v6 = vld [vmem:[%s350_s0 + $0x90] sm:$0xf]  ;;  %245 = vmatprep.subr.msk.mxu1 %vm36_vm0, %v30_v4 }
   0x3   :  { %243 = vmatpush1.msk.msra.mxu0 %vm36_vm0, %v27_v1  ;;  %v20_v7 = vld [vmem:[%s350_s0 + $0x48] sm:$0xff]  ;;  %v26_v8 = vld [vmem:[%s350_s0 + $0x78] sm:$0xff]  ;;  %246 = vmatpush1.msk.msra.mxu1 %vm36_vm0, %v29_v6  ;;  %v19_v9 = vld [vmem:[%s350_s0 + $0x40] sm:$0xff] }
   0x4   :  { %73 = vmatprep.subr.mxu0 %v24_v2  ;;  %v25_v10 = vld [vmem:[%s350_s0 + $0x70] sm:$0xff]  ;;  %v22_v11 = vld [vmem:[%s350_s0 + $0x58] sm:$0xff]  ;;  %144 = vmatprep.subr.mxu1 %v26_v8  ;;  %v16_v12 = vld [vmem:[%s350_s0 + $0x28] sm:$0xff] }
   0x5   :  { %74 = vmatpush1.msra.mxu0 %v23_v5  ;;  %v21_v13 = vld [vmem:[%s350_s0 + $0x50] sm:$0xff]  ;;  %145 = vmatpush1.msra.mxu1 %v25_v10  ;;  %v15_v14 = vld [vmem:[%s350_s0 + $0x20] sm:$0xff]  ;;  %v18_v15 = vld [vmem:[%s350_s0 + $0x38] sm:$0xff] }
   0x6   :  { %75 = vmatprep.subr.mxu0 %v20_v7  ;;  %146 = vmatprep.subr.mxu1 %v22_v11  ;;  %v12_v16 = vld [vmem:[%s350_s0 + $0x8] sm:$0xff]  ;;  %v17_v17 = vld [vmem:[%s350_s0 + $0x30] sm:$0xff]  ;;  %v11_v18 = vld [vmem:[%s350_s0] sm:$0xff] }
   0x7   :  { %76 = vmatpush1.msra.mxu0 %v19_v9  ;;  %147 = vmatpush1.msra.mxu1 %v21_v13  ;;  %v14_v19 = vld [vmem:[%s350_s0 + $0x18] sm:$0xff]  ;;  %v31_v20 = vld [vmem:[%s351_s1] sm:$0xff]  ;;  %v13_v21 = vld [vmem:[%s350_s0 + $0x10] sm:$0xff] }
   0x8   :  { %77 = vmatprep.subr.mxu0 %v16_v12  ;;  %148 = vmatprep.subr.mxu1 %v18_v15 }
   0x9   :  { %78 = vmatpush1.msra.mxu0 %v15_v14  ;;  %149 = vmatpush1.msra.mxu1 %v17_v17 }
   0xa   :  { %79 = vmatprep.subr.mxu0 %v12_v16  ;;  %150 = vmatprep.subr.mxu1 %v14_v19 }
   0xb   :  { %80 = vmatpush1.msra.mxu0 %v11_v18  ;;  %151 = vmatpush1.msra.mxu1 %v13_v21 }
   0xc   :  { %244 = vmatmul.mubr.msk.f32.vlgmr.msra.gmra.mxu0 %vm32_vm1, %v31_v20  ;;  %247 = vmatmul.mubr.msk.f32.vlgmr.msra.gmra.mxu1 %vm32_vm1, %v31_v20 }
  0xcc   :  { %v115_v22 = vpop.f32.mrf.mxu0  ;;  %v186_v23 = vpop.f32.mrf.mxu1 }
  0xcd   :  { %v194_v28 = vmul.f32 %v115_v22, %v115_v22  ;;  %v217_v31 = vmul.f32 %v186_v23, %v186_v23 }
  0xce   :  { %v117_v24 = vpop.f32.mrf.mxu0  ;;  %v188_v26 = vpop.f32.mrf.mxu1 }
  0xcf   :  { %v195_v25 = vmul.f32 %v117_v24, %v117_v24  ;;  %v191_v27 = vadd.f32 %v117_v24, %v115_v22  ;;  %v218_v29 = vmul.f32 %v188_v26, %v188_v26  ;;  %v214_v32 = vadd.f32 %v188_v26, %v186_v23 }
  0xd1   :  { %192 = vadd.xlane.f32.xlu0 %v191_v27  ;;  %v196_v30 = vadd.f32 %v195_v25, %v194_v28  ;;  %v219_v33 = vadd.f32 %v218_v29, %v217_v31 }
  0xd3   :  { %197 = vadd.xlane.f32.xlu1 %v196_v30 }
  0xd5   :  { %215 = vadd.xlane.f32.xlu0 %v214_v32 }
  0xd7   :  { %220 = vadd.xlane.f32.xlu1 %v219_v33 }
 0x15a   :  { %v193_v34 = vpop.xlane.xlu0 %192 }
 0x15b   :  { %v199_v35 = vmul.f32 0.00390625, %v193_v34 }
 0x15c   :  { %v198_v36 = vpop.xlane.xlu1 %197 }
 0x15d   :  { %v200_v37 = vmul.f32 0.00390625, %v198_v36  ;;  %v201_v38 = vmul.f32 %v199_v35, %v199_v35  ;;  %v204_v50 = vsub.f32 %v115_v22, %v199_v35  ;;  %v205_v51 = vsub.f32 %v117_v24, %v199_v35 }
 0x15e   :  { %v216_v39 = vpop.xlane.xlu0 %215 }
 0x15f   :  { %v202_v40 = vsub.f32 %v200_v37, %v201_v38  ;;  %v222_v41 = vmul.f32 0.00390625, %v216_v39 }
 0x160   :  { %v221_v42 = vpop.xlane.xlu1 %220 }
 0x161   :  { %v203_v43 = vmax.f32 %v202_v40, 0.0  ;;  %v223_v44 = vmul.f32 0.00390625, %v221_v42  ;;  %v224_v45 = vmul.f32 %v222_v41, %v222_v41  ;;  %v227_v57 = vsub.f32 %v186_v23, %v222_v41 }
 0x162   :  { %v228_v58 = vsub.f32 %v188_v26, %v222_v41 }
 0x163   :  { %v206_v46 = vadd.f32 1e-05, %v203_v43  ;;  %v225_v47 = vsub.f32 %v223_v44, %v224_v45 }
 0x165   :  { %251 = vrsqrt.f32 %v206_v46  ;;  %v226_v48 = vmax.f32 %v225_v47, 0.0 }
 0x167   :  { %v229_v49 = vadd.f32 1e-05, %v226_v48 }
 0x169   :  { %253 = vrsqrt.f32 %v229_v49 }
 0x172   :  { %v252_v52 = vpop.eup %251 }
 0x173   :  { %v208_v53 = vmul.f32 %v252_v52, %v204_v50  ;;  %v209_v54 = vmul.f32 %v252_v52, %v205_v51 }
 0x175   :  { %v210_v55 = vmax.f32 %v208_v53, 0.0  ;;  %v211_v56 = vmax.f32 %v209_v54, 0.0 }
 0x176   :  { %v254_v59 = vpop.eup %253 }
 0x177   :  { %212 = vst [vmem:[%s352_s2] sm:$0xff] %v210_v55  ;;  %213 = vst [vmem:[%s352_s2 + $0x8] sm:$0xff] %v211_v56  ;;  %v231_v60 = vmul.f32 %v254_v59, %v227_v57  ;;  %v232_v61 = vmul.f32 %v254_v59, %v228_v58 }
 0x179   :  { %v233_v62 = vmax.f32 %v231_v60, 0.0  ;;  %v234_v63 = vmax.f32 %v232_v61, 0.0 }
 0x17b   :  { %248 = vst [vmem:[%s352_s2 + $0x10] sm:$0xff] %v233_v62  ;;  %249 = vst [vmem:[%s352_s2 + $0x18] sm:$0xff] %v234_v63 }

</bundles_post_ra>
